<compile_context>
chip_gen: v6e
topology: v6e:2x2x1
jax: 0.10.0
libtpu: 0.0.40
codegen_flags: <defaults>
</compile_context>

<pallas_src>
import jax
import jax.numpy as jnp
from jax.experimental import pallas as pl
from jax.experimental.pallas import tpu as pltpu


def attention_kernel(hw1_ref, enc_ref, w2_ref, v_ref, out_ref):
    # hw1_ref: (Bblk, H)     f32          hidden @ W1.T + bias (hoisted)
    # enc_ref: (T, Bblk, H)  f32 / bf16   encoder tile, native (T, B, H) layout
    # w2_ref:  (H, H)        enc dtype    pre-transposed encoder half of attn.W
    # v_ref:   (1, H)        f32
    # out_ref: (1, T, Bblk)  f32          relu(scores), rearranged in wrapper
    t, bblk, h = enc_ref.shape

    # One MXU matmul for the whole tile: (T*Bblk, H) @ (H, H) -> f32.
    # The reshape is layout-free because Bblk is a multiple of the sublane
    # packing (8 for f32, 16 for bf16) -- enforced by the wrapper.
    enc2d = enc_ref[...].reshape(t * bblk, h)
    proj = jnp.dot(enc2d, w2_ref[...], preferred_element_type=jnp.float32)
    logits = proj.reshape(t, bblk, h) + hw1_ref[...][None, :, :]     # (T,Bblk,H)

    # Softmax over T (axis 0) in f32, with the denominator folded into v so no
    # full-size (T,Bblk,H) divide / `soft` temporary is materialized.
    m = jnp.max(logits, axis=0, keepdims=True)                       # (1,Bblk,H)
    e = jnp.exp(logits - m)                                          # (T,Bblk,H)
    denom = jnp.sum(e, axis=0)                                       # (Bblk,H)
    scale = v_ref[...] * pl.reciprocal(denom, approx=True)           # (Bblk,H)

    # scores[t, b] = sum_h e[t,b,h] * v[h] / denom[b,h]
    scores_tb = jnp.sum(e * scale[None, :, :], axis=2)               # (T,Bblk)
    out_ref[0] = jnp.maximum(scores_tb, 0.0).astype(out_ref.dtype)


def _round_up(x, m):
    return ((x + m - 1) // m) * m


def _choose_block_b(B, T, H, enc_bytes, vmem_limit):
    """Pick a batch block: sublane-aligned, VMEM-safe, ~2048 MXU rows/step."""
    min_b = max(8, 32 // enc_bytes)            # 8 for f32, 16 for bf16
    budget = int(vmem_limit * 0.6)             # headroom for pipelining/regalloc
    weights = 2 * H * H * (enc_bytes + 4)      # W2 (double-buffered) + v + slack
    # per batch-row: enc tile x2 buffers + ~3 f32 tile-sized temporaries
    per_row = T * H * (2 * enc_bytes + 3 * 4) + 2 * H * 4 + 2 * T * 4
    fit = (budget - weights) // max(per_row, 1)
    target = -(-2048 // max(T, 1))             # ~2048 rows into the MXU per step
    bb = max(min_b, (min(fit, target) // min_b) * min_b)
    if B >= 2 * min_b:                         # keep >=2 grid steps (megacore)
        bb = min(bb, max(min_b, ((B // 2) // min_b) * min_b))
    bb = min(bb, max(min_b, (B // min_b) * min_b))   # never exceed the batch
    return bb, min_b
    # TODO(synk): add a T grid axis with online softmax for very large T*H so
    # the minimum (min_b, T, H) tile + f32 temporaries always fits VMEM.


def attention_forward(hidden, encoder_outputs, attn_w, attn_b, v, *, block_b=None):
    """hidden: (B, H); encoder_outputs: (T, B, H) in its native seq-first layout
    (streamed as-is: no wrapper transpose / cast / large pad). Returns (B,1,T) f32."""
    T, B, H = encoder_outputs.shape
    enc = encoder_outputs
    enc_bytes = jnp.dtype(enc.dtype).itemsize

    # Split the (H, 2H) Linear weight: the `hidden` half is one tiny XLA matmul
    # in the wrapper; only the encoder half goes through the kernel MXU matmul.
    w1 = attn_w[:, :H]
    w2 = attn_w[:, H:]
    hw1 = (hidden.astype(jnp.float32) @ w1.T.astype(jnp.float32)
           + attn_b.astype(jnp.float32))                      # (B, H) f32
    w2t = w2.T.astype(enc.dtype)                              # (H, H), matmul in enc dtype
    v2 = v.reshape(1, H).astype(jnp.float32)

    # Per-generation scoped-VMEM budget (v5e/v6e: 128 MiB phys -> 96 MiB,
    # v7x: 64 MiB phys -> 48 MiB).
    try:
        vmem_cap = int(pltpu.get_tpu_info().vmem_capacity_bytes)
    except Exception:
        vmem_cap = 64 * 1024 * 1024
    vmem_limit = int(min(vmem_cap * 3 // 4, 96 * 1024 * 1024))

    min_b = max(8, 32 // enc_bytes)
    if block_b is None:
        block_b, min_b = _choose_block_b(B, T, H, enc_bytes, vmem_limit)
    else:
        block_b = max(min_b, (min(block_b, max(B, min_b)) // min_b) * min_b)

    # Only tiny batches (B < sublane packing) are padded; larger batches rely on
    # Pallas partial blocks, so the encoder is never copied in the wrapper.
    B_eff = B
    if B < min_b:
        pad = min_b - B
        enc = jnp.pad(enc, ((0, 0), (0, pad), (0, 0)))
        hw1 = jnp.pad(hw1, ((0, pad), (0, 0)))
        B_eff = min_b
        block_b = min_b

    grid_b = pl.cdiv(B_eff, block_b)

    out3 = pl.pallas_call(
        attention_kernel,
        out_shape=jax.ShapeDtypeStruct((grid_b, T, block_b), jnp.float32),
        grid=(grid_b,),
        in_specs=[
            pl.BlockSpec((block_b, H), lambda i: (i, 0)),         # hw1 rows
            pl.BlockSpec((T, block_b, H), lambda i: (0, i, 0)),   # enc, native layout
            pl.BlockSpec((H, H), lambda i: (0, 0)),               # W2 (resident)
            pl.BlockSpec((1, H), lambda i: (0, 0)),               # v  (resident)
        ],
        out_specs=pl.BlockSpec((1, T, block_b), lambda i: (i, 0, 0)),
        compiler_params=pltpu.CompilerParams(
            dimension_semantics=("parallel",),      # megacore split on v7x
            vmem_limit_bytes=vmem_limit,
        ),
    )(hw1, enc, w2t, v2)

    # (grid_b, T, block_b) -> (B, T): O(B*T) rearrangement (1/H of enc traffic).
    scores = jnp.transpose(out3, (0, 2, 1)).reshape(grid_b * block_b, T)[:B]
    return scores[:, None, :]


def attention_reference(hidden, encoder_outputs, attn_w, attn_b, v):
    """Pure-JAX reference mirroring the PyTorch forward exactly."""
    T, B, H = encoder_outputs.shape
    h = jnp.broadcast_to(hidden[None, :, :], (T, B, H)).transpose(1, 0, 2)  # (B,T,H)
    enc = encoder_outputs.transpose(1, 0, 2)                                # (B,T,H)
    x = jnp.concatenate([h, enc], axis=2)                                   # (B,T,2H)
    lin = jnp.einsum("btk,hk->bth", x, attn_w) + attn_b                     # (B,T,H)
    e = jax.nn.softmax(lin, axis=1)                                         # over T
    e = e.transpose(0, 2, 1)                                                # (B,H,T)
    scores = jnp.einsum("h,bht->bt", v, e)                                  # (B,T)
    return jax.nn.relu(scores)[:, None, :]                                  # (B,1,T)


if __name__ == "__main__":
    key = jax.random.PRNGKey(0)
    k1, k2, k3, k4, k5 = jax.random.split(key, 5)

    # ---- small config matching the module (B=2, T=8, H=32), f32 ----
    B, T, H = 2, 8, 32
    stdv = 1.0 / (H ** 0.5)
    attn_w = jax.random.uniform(k1, (H, 2 * H), jnp.float32, -stdv, stdv)
    attn_b = jax.random.uniform(k2, (H,), jnp.float32, -stdv, stdv)
    v = jax.random.uniform(k3, (H,), jnp.float32, -stdv, stdv)
    hidden = jax.random.normal(k4, (B, H), jnp.float32)
    encoder_outputs = jax.random.normal(k5, (T, B, H), jnp.float32)

    ref = attention_reference(hidden, encoder_outputs, attn_w, attn_b, v)
    out = jax.block_until_ready(
        attention_forward(hidden, encoder_outputs, attn_w, attn_b, v))
    assert out.shape == (B, 1, T), out.shape
    assert jnp.allclose(out, ref, atol=2e-3, rtol=2e-3), \
        f"f32 max err {jnp.max(jnp.abs(out - ref))}"

    # ---- bf16 encoder stream (producer already emits bf16; no wrapper cast) ----
    enc_bf16 = encoder_outputs.astype(jnp.bfloat16)
    ref_bf16 = attention_reference(hidden, enc_bf16.astype(jnp.float32),
                                   attn_w, attn_b, v)
    out_bf16 = jax.block_until_ready(
        attention_forward(hidden, enc_bf16, attn_w, attn_b, v))
    assert jnp.allclose(out_bf16, ref_bf16, atol=2e-2, rtol=2e-2), \
        f"bf16 max err {jnp.max(jnp.abs(out_bf16 - ref_bf16))}"

    # ---- multi-block grid + partial last block (B not a multiple of block_b) ----
    B2, T2, H2 = 20, 16, 128
    stdv2 = 1.0 / (H2 ** 0.5)
    attn_w2 = jax.random.uniform(k1, (H2, 2 * H2), jnp.float32, -stdv2, stdv2)
    attn_b2 = jax.random.uniform(k2, (H2,), jnp.float32, -stdv2, stdv2)
    v_2 = jax.random.uniform(k3, (H2,), jnp.float32, -stdv2, stdv2)
    hidden2 = jax.random.normal(k4, (B2, H2), jnp.float32)
    enc2 = jax.random.normal(k5, (T2, B2, H2), jnp.float32)

    ref2 = attention_reference(hidden2, enc2, attn_w2, attn_b2, v_2)
    out2 = jax.block_until_ready(
        attention_forward(hidden2, enc2, attn_w2, attn_b2, v_2))
    assert out2.shape == (B2, 1, T2), out2.shape
    assert jnp.allclose(out2, ref2, atol=2e-3, rtol=2e-3), \
        f"multi-block max err {jnp.max(jnp.abs(out2 - ref2))}"

    print("KERNEL_OK")
</pallas_src>

<mosaic_0001>
module attributes {stable_mosaic.version = 11 : i64} {
  func.func @attention_kernel(%arg0: i32, %arg1: memref<8x32xf32, #tpu.memory_space<vmem>>, %arg2: memref<8x8x32xf32, #tpu.memory_space<vmem>>, %arg3: memref<32x32xf32, #tpu.memory_space<vmem>>, %arg4: memref<1x32xf32, #tpu.memory_space<vmem>>, %arg5: memref<1x8x8xf32, #tpu.memory_space<vmem>>) attributes {dimension_semantics = [#tpu.dimension_semantics<parallel>], iteration_bounds = array<i64: 1>, scalar_prefetch = 0 : i64, scratch_operands = 0 : i64, tpu.core_type = #tpu.core_type<tc>, window_params = [{transform_indices = @transform_0, window_bounds = array<i64: 8, 32>}, {transform_indices = @transform_1, window_bounds = array<i64: 8, 8, 32>}, {pipeline_mode = #tpu.pipeline_mode<synchronous>, transform_indices = @transform_2, window_bounds = array<i64: 32, 32>}, {pipeline_mode = #tpu.pipeline_mode<synchronous>, transform_indices = @transform_3, window_bounds = array<i64: 1, 32>}, {transform_indices = @transform_4, window_bounds = array<i64: 1, 8, 8>}]} {
    %c0 = arith.constant 0 : index
    %c0_0 = arith.constant 0 : index
    %c0_1 = arith.constant 0 : index
    %0 = vector.load %arg2[%c0, %c0_0, %c0_1] : memref<8x8x32xf32, #tpu.memory_space<vmem>>, vector<8x8x32xf32>
    %1 = vector.shape_cast %0 : vector<8x8x32xf32> to vector<64x32xf32>
    %c0_2 = arith.constant 0 : index
    %c0_3 = arith.constant 0 : index
    %2 = vector.load %arg3[%c0_2, %c0_3] : memref<32x32xf32, #tpu.memory_space<vmem>>, vector<32x32xf32>
    %cst = arith.constant dense<0.000000e+00> : vector<64x32xf32>
    %3 = tpu.matmul %1, %2, %cst {dimension_numbers = #tpu.dot_dimension_numbers<[1], [0], [0], [1], [0, 0, 1, 1], [], []>} : vector<64x32xf32>, vector<32x32xf32>, vector<64x32xf32> -> vector<64x32xf32>
    %4 = vector.shape_cast %3 : vector<64x32xf32> to vector<8x8x32xf32>
    %c0_4 = arith.constant 0 : index
    %c0_5 = arith.constant 0 : index
    %5 = vector.load %arg1[%c0_4, %c0_5] : memref<8x32xf32, #tpu.memory_space<vmem>>, vector<8x32xf32>
    %6 = vector.shape_cast %5 : vector<8x32xf32> to vector<1x8x32xf32>
    %7 = vector.broadcast %6 : vector<1x8x32xf32> to vector<8x8x32xf32>
    %8 = arith.addf %4, %7 : vector<8x8x32xf32>
    %cst_6 = arith.constant dense<0xFF800000> : vector<8x32xf32>
    %9 = vector.multi_reduction <maximumf>, %8, %cst_6 [0] : vector<8x8x32xf32> to vector<8x32xf32>
    %10 = vector.shape_cast %9 : vector<8x32xf32> to vector<1x8x32xf32>
    %11 = vector.broadcast %10 : vector<1x8x32xf32> to vector<8x8x32xf32>
    %12 = arith.subf %8, %11 : vector<8x8x32xf32>
    %13 = math.exp %12 : vector<8x8x32xf32>
    %cst_7 = arith.constant dense<0.000000e+00> : vector<8x32xf32>
    %14 = vector.multi_reduction <add>, %13, %cst_7 [0] : vector<8x8x32xf32> to vector<8x32xf32>
    %c0_8 = arith.constant 0 : index
    %c0_9 = arith.constant 0 : index
    %15 = vector.load %arg4[%c0_8, %c0_9] : memref<1x32xf32, #tpu.memory_space<vmem>>, vector<1x32xf32>
    %16 = tpu.reciprocal %14 {approx = true} : vector<8x32xf32> -> vector<8x32xf32>
    %17 = vector.broadcast %15 : vector<1x32xf32> to vector<8x32xf32>
    %18 = arith.mulf %17, %16 : vector<8x32xf32>
    %19 = vector.shape_cast %18 : vector<8x32xf32> to vector<1x8x32xf32>
    %20 = vector.broadcast %19 : vector<1x8x32xf32> to vector<8x8x32xf32>
    %21 = arith.mulf %13, %20 : vector<8x8x32xf32>
    %cst_10 = arith.constant dense<0.000000e+00> : vector<8x8xf32>
    %22 = vector.multi_reduction <add>, %21, %cst_10 [2] : vector<8x8x32xf32> to vector<8x8xf32>
    %cst_11 = arith.constant 0.000000e+00 : f32
    %23 = vector.broadcast %cst_11 : f32 to vector<8x8xf32>
    %24 = arith.maximumf %22, %23 : vector<8x8xf32>
    %c0_12 = arith.constant 0 : index
    %c0_13 = arith.constant 0 : index
    %c0_14 = arith.constant 0 : index
    %25 = vector.load %arg5[%c0_12, %c0_13, %c0_14] : memref<1x8x8xf32, #tpu.memory_space<vmem>>, vector<1x8x8xf32>
    %26 = vector.shape_cast %25 : vector<1x8x8xf32> to vector<8x8xf32>
    %27 = vector.shape_cast %24 : vector<8x8xf32> to vector<1x8x8xf32>
    tpu.vector_store %arg5[%c0_12, %c0_13, %c0_14], %27 {strides = array<i32>} : memref<1x8x8xf32, #tpu.memory_space<vmem>>, vector<1x8x8xf32>,
    return
  }
  func.func @transform_0(%arg0: i32) -> (i32, i32) {
    %c0_i32 = arith.constant 0 : i32
    %c0_i32_0 = arith.constant 0 : i32
    return %arg0, %c0_i32 : i32, i32
  }
  func.func @transform_1(%arg0: i32) -> (i32, i32, i32) {
    %c0_i32 = arith.constant 0 : i32
    %c0_i32_0 = arith.constant 0 : i32
    %c0_i32_1 = arith.constant 0 : i32
    return %c0_i32, %arg0, %c0_i32_0 : i32, i32, i32
  }
  func.func @transform_2(%arg0: i32) -> (i32, i32) {
    %c0_i32 = arith.constant 0 : i32
    %c0_i32_0 = arith.constant 0 : i32
    %c0_i32_1 = arith.constant 0 : i32
    return %c0_i32, %c0_i32_0 : i32, i32
  }
  func.func @transform_3(%arg0: i32) -> (i32, i32) {
    %c0_i32 = arith.constant 0 : i32
    %c0_i32_0 = arith.constant 0 : i32
    %c0_i32_1 = arith.constant 0 : i32
    return %c0_i32, %c0_i32_0 : i32, i32
  }
  func.func @transform_4(%arg0: i32) -> (i32, i32, i32) {
    %c0_i32 = arith.constant 0 : i32
    %c0_i32_0 = arith.constant 0 : i32
    %c0_i32_1 = arith.constant 0 : i32
    return %arg0, %c0_i32, %c0_i32_0 : i32, i32, i32
  }
}

</mosaic_0001>

<bundles_post_ra>
// kernel: tpu_custom_call.1
= control target key start
LH: loop header
LB: loop body
LE: loop exit
PB: predicated region body
PF: predicated region fallthrough
CT: control target
= control target key end

     0   :  { %9 = vsyncpa [#allocation3], 0  ;;  %s623_s0 = inlined_call_operand.hbm [shape: f32[8,32], index: 0, kind: input, shape index: {}]   ;;  %s624_s1 = inlined_call_operand.hbm [shape: f32[8,8,32], index: 1, kind: input, shape index: {}]   ;;  %s625_s2 = inlined_call_operand.hbm [shape: f32[32,32], index: 2, kind: input, shape index: {}]   ;;  %s626_s3 = inlined_call_operand.vmem [shape: f32[1,32], index: 3, kind: input, shape index: {}]   ;;  %s627_s4 = inlined_call_operand.hbm [shape: f32[1,8,8], index: 4, kind: output, shape index: {}]  }
   0x1   :  { %10 = vsyncpa [#allocation6], 0 }
   0x2   :  { %11 = vsyncpa [#allocation4], 0  ;;  %s545_s15 = smov [#allocation5]  }
   0x3   :  { %s27_s16 = sshll.u32 %s545_s15, 4  ;;  %s28_s16 = int_to_ptr.vmem [resolvable:$true] %s27_s16 }
   0x4   :  { %s467_s17 = scalar_lea.vmem %s28_s16, 1024  ;;  %p472_p1 = scmp.lt.s32.totalorder %s28_s16, %s28_s16 }
   0x5   :  { %p468_p0 = scmp.ne.s32.totalorder %s28_s16, %s467_s17  ;;  %p473_p2 = scmp.lt.s32.totalorder %s467_s17, %s467_s17 }
   0x7   :  { %p474_p3 = por %p473_p2, %p472_p1 }
   0x9   :  { %p475_p4 = pnand %p474_p3, %p468_p0 }
   0xb   :  { %478 = shalt.err (!%p475_p4)
}
   0xc   :  { %s546_s18 = smov 128   ;;  %s547_s19 = smov 8  }
   0xd   :  { %33 = dma.hbm_to_vmem [thread:$0]  %s624_s1, 1024, %s28_s16, [#allocation6], %s546_s18, %s546_s18, %s547_s19  }
   0xe   :  { %s548_s22 = smov [#allocation2]   ;;  %s549_s24 = smov [#allocation7]  }
   0xf   :  { %s18_s23 = sshll.u32 %s548_s22, 4  ;;  %s39_s25 = sshll.u32 %s549_s24, 4  ;;  %s19_s23 = int_to_ptr.vmem [resolvable:$true] %s18_s23  ;;  %s40_s25 = int_to_ptr.vmem [resolvable:$true] %s39_s25 }
  0x10   :  { %s487_s26 = scalar_lea.vmem %s19_s23, 128  ;;  %p492_p6 = scmp.lt.s32.totalorder %s19_s23, %s19_s23 }
  0x11   :  { %p488_p5 = scmp.ne.s32.totalorder %s19_s23, %s487_s26  ;;  %p493_p7 = scmp.lt.s32.totalorder %s487_s26, %s487_s26 }
  0x13   :  { %p494_p8 = por %p493_p7, %p492_p6 }
  0x15   :  { %p495_p9 = pnand %p494_p8, %p488_p5 }
  0x17   :  { %498 = shalt.err (!%p495_p9)
}
  0x18   :  { %21 = dma.hbm_to_vmem [thread:$0]  %s623_s0, 128, %s19_s23, [#allocation3]  }
  0x19   :  { %s507_s29 = scalar_lea.vmem %s40_s25, 512  ;;  %p512_p11 = scmp.lt.s32.totalorder %s40_s25, %s40_s25 }
  0x1a   :  { %p508_p10 = scmp.ne.s32.totalorder %s40_s25, %s507_s29  ;;  %p513_p12 = scmp.lt.s32.totalorder %s507_s29, %s507_s29 }
  0x1c   :  { %p514_p13 = por %p513_p12, %p512_p11 }
  0x1e   :  { %p515_p0 = pnand %p514_p13, %p508_p10 }
  0x20   :  { %518 = shalt.err (!%p515_p0)
}
  0x21   :  { %45 = dma.hbm_to_vmem [thread:$0]  %s625_s2, 512, %s40_s25, [#allocation6], %s546_s18, %s546_s18, %s547_s19  }
  0x22   :  { %539 = dma.done.wait [#allocation3], 128  }
  0x23   :  { %540 = vsyncadd [#allocation3], 4294967168 }
  0x24   :  { %541 = dma.done.wait [#allocation6], 1536  }
  0x25   :  { %542 = vsyncadd [#allocation6], 4294965760  ;;  %v68_v0 = vld [vmem:[#allocation7 + $0x18] sm:$0xff]  ;;  %v67_v1 = vld [vmem:[#allocation7 + $0x10] sm:$0xff]  ;;  %vm69_vm0 = vcmask 261120   ;;  %vm353_vm1 = vcmask 1041409  }
  0x26   :  { %407 = vmatprep.subr.mxu0 %v68_v0  ;;  %427 = vmatprep.subr.mxu1 %v68_v0  ;;  %v66_v2 = vld [vmem:[#allocation7 + $0x8] sm:$0xff]  ;;  %v65_v3 = vld [vmem:[#allocation7] sm:$0xff]  ;;  %v59_v8 = vld [vmem:[#allocation5 + $0x10] sm:$0xff]  ;;  %vm355_vm2 = vcmask 1042434   ;;  %vm357_vm3 = vcmask 1043459   ;;  %vm359_vm4 = vcmask 1044484  }
  0x27   :  { %408 = vmatpush3.msra.mxu0 %v68_v0  ;;  %431 = vmatpush3.msra.mxu1 %v68_v0  ;;  %v57_v4 = vld [vmem:[#allocation5] sm:$0xff]  ;;  %v58_v6 = vld [vmem:[#allocation5 + $0x8] sm:$0xff]  ;;  %v63_v9 = vld [vmem:[#allocation5 + $0x30] sm:$0xff]  ;;  %vm361_vm5 = vcmask 1045509   ;;  %vm363_vm6 = vcmask 1046534   ;;  %vm365_vm7 = vcmask 1047559  }
  0x28   :  { %409 = vmatprep.subr.mxu0 %v67_v1  ;;  %428 = vmatprep.subr.mxu1 %v67_v1  ;;  %v61_v5 = vld [vmem:[#allocation5 + $0x20] sm:$0xff]  ;;  %v62_v7 = vld [vmem:[#allocation5 + $0x28] sm:$0xff]  ;;  %v60_v10 = vld [vmem:[#allocation5 + $0x18] sm:$0xff]  ;;  %vm368_vm8 = vcmask 64512  }
  0x29   :  { %410 = vmatpush3.msra.mxu0 %v67_v1  ;;  %432 = vmatpush3.msra.mxu1 %v67_v1  ;;  %v64_v11 = vld [vmem:[#allocation5 + $0x38] sm:$0xff] }
  0x2a   :  { %411 = vmatprep.subr.mxu0 %v66_v2  ;;  %429 = vmatprep.subr.mxu1 %v66_v2  ;;  %v199_v12 = vld [vmem:[#allocation2] sm:$0xff] }
  0x2b   :  { %412 = vmatpush3.msra.mxu0 %v66_v2  ;;  %433 = vmatpush3.msra.mxu1 %v66_v2 }
  0x2c   :  { %413 = vmatprep.subr.mxu0 %v65_v3  ;;  %430 = vmatprep.subr.mxu1 %v65_v3 }
  0x2d   :  { %414 = vmatpush3.msra.mxu0 %v65_v3  ;;  %434 = vmatpush3.msra.mxu1 %v65_v3 }
  0x2e   :  { %415 = vmatprep.mubr.msk.f32.mxu0 %vm69_vm0, %v57_v4  ;;  %421 = vmatprep.mubr.msk.f32.mxu1 %vm69_vm0, %v61_v5 }
  0x2f   :  { %416 = vmatmul.mubr.msk.f32.vlgmr.msra.gmra.mxu0 %vm69_vm0, %v58_v6  ;;  %422 = vmatmul.mubr.msk.f32.vlgmr.msra.gmra.mxu1 %vm69_vm0, %v62_v7 }
  0x30   :  { %418 = vmatprep.mubr.msk.f32.mxu0 %vm69_vm0, %v59_v8  ;;  %424 = vmatprep.mubr.msk.f32.mxu1 %vm69_vm0, %v63_v9 }
  0x33   :  { %419 = vmatmul.mubr.msk.f32.gmra.mxu0 %vm69_vm0, %v60_v10  ;;  %425 = vmatmul.mubr.msk.f32.gmra.mxu1 %vm69_vm0, %v64_v11 }
  0xef   :  { %v417_v13 = vpop.f32.mrf.mxu0  ;;  %v423_v14 = vpop.f32.mrf.mxu1 }
  0xf0   :  { %v201_v15 = vadd.f32 %v417_v13, %v199_v12  ;;  %v205_v16 = vadd.f32 %v423_v14, %v199_v12 }
  0xf1   :  { %v160_v17 = vpop.f32.mrf.mxu0  ;;  %v180_v18 = vpop.f32.mrf.mxu1 }
  0xf2   :  { %v200_v19 = vadd.f32 %v199_v12, %v160_v17  ;;  %v204_v20 = vadd.f32 %v199_v12, %v180_v18  ;;  %v209_v27 = vsel %vm69_vm0, %v201_v15, -inf  ;;  %v214_v28 = vsel %vm69_vm0, %v205_v16, -inf }
  0xf3   :  { %v420_v21 = vpop.f32.mrf.mxu0  ;;  %v426_v22 = vpop.f32.mrf.mxu1  ;;  %v215_v38 = vmax.f32 %v209_v27, %v214_v28 }
  0xf4   :  { %v208_v23 = vsel %vm69_vm0, %v200_v19, -inf  ;;  %v212_v24 = vsel %vm69_vm0, %v204_v20, -inf  ;;  %v203_v25 = vadd.f32 %v420_v21, %v199_v12  ;;  %v207_v26 = vadd.f32 %v426_v22, %v199_v12 }
  0xf5   :  { %v170_v29 = vpop.f32.mrf.mxu0  ;;  %v190_v30 = vpop.f32.mrf.mxu1  ;;  %v213_v35 = vmax.f32 %v208_v23, %v212_v24 }
  0xf6   :  { %v211_v31 = vsel %vm69_vm0, %v203_v25, -inf  ;;  %v218_v32 = vsel %vm69_vm0, %v207_v26, -inf  ;;  %v202_v33 = vadd.f32 %v199_v12, %v170_v29  ;;  %v206_v34 = vadd.f32 %v199_v12, %v190_v30 }
  0xf7   :  { %v219_v39 = vmax.f32 %v211_v31, %v218_v32  ;;  %v220_v41 = vmax.f32 %v213_v35, %v215_v38  ;;  %v319_v38 = vlaneseq }
  0xf8   :  { %v210_v36 = vsel %vm69_vm0, %v202_v33, -inf  ;;  %v216_v37 = vsel %vm69_vm0, %v206_v34, -inf }
  0xf9   :  { %v217_v40 = vmax.f32 %v210_v36, %v216_v37 }
  0xfb   :  { %v221_v42 = vmax.f32 %v217_v40, %v219_v39  ;;  %v320_v39 = vand.u32 127, %v319_v38  ;;  %v322_v40 = vshrl.u32 %v319_v38, 7 }
  0xfd   :  { %v222_v43 = vmax.f32 %v220_v41, %v221_v42 }
  0xff   :  { %v223_v44 = vsub.f32 %v200_v19, %v222_v43  ;;  %v224_v45 = vsub.f32 %v201_v15, %v222_v43  ;;  %v226_v46 = vsub.f32 %v203_v25, %v222_v43  ;;  %v225_v49 = vsub.f32 %v202_v33, %v222_v43  ;;  %v394_v19 = vld [vmem:[%s626_s3] ss:$0 sm:$0xff]  ;;  %s550_s3 = smov [#allocation8]  }
 0x100   :  { %v227_v50 = vsub.f32 %v204_v20, %v222_v43  ;;  %v228_v52 = vsub.f32 %v205_v16, %v222_v43  ;;  %v229_v54 = vsub.f32 %v206_v34, %v222_v43  ;;  %v230_v56 = vsub.f32 %v207_v26, %v222_v43  ;;  %s376_s5 = sshll.u32 %s550_s3, 4  ;;  %s377_s5 = int_to_ptr.vmem [resolvable:$true] %s376_s5 }
 0x101   :  { %v231_v47 = vmul.f32 1.442695, %v223_v44  ;;  %v233_v48 = vmul.f32 1.442695, %v224_v45  ;;  %v237_v51 = vmul.f32 1.442695, %v226_v46  ;;  %v323_v43 = vsub.s32 %v320_v39, %v322_v40  ;;  %p524_p2 = scmp.lt.s32.totalorder %s377_s5, %s377_s5 }
 0x102   :  { %v235_v53 = vmul.f32 1.442695, %v225_v49  ;;  %v239_v55 = vmul.f32 1.442695, %v227_v50  ;;  %v241_v57 = vmul.f32 1.442695, %v228_v52 }
 0x103   :  { %441 = vpow2.f32 %v231_v47  ;;  %v243_v58 = vmul.f32 1.442695, %v229_v54  ;;  %v245_v59 = vmul.f32 1.442695, %v230_v56  ;;  %s519_s6 = scalar_lea.vmem %s377_s5, 128 }
 0x104   :  { %443 = vpow2.f32 %v233_v48  ;;  %p520_p1 = scmp.ne.s32.totalorder %s377_s5, %s519_s6  ;;  %p525_p3 = scmp.lt.s32.totalorder %s519_s6, %s519_s6 }
 0x105   :  { %445 = vpow2.f32 %v237_v51 }
 0x106   :  { %447 = vpow2.f32 %v235_v53  ;;  %p526_p4 = por %p525_p3, %p524_p2 }
 0x107   :  { %449 = vpow2.f32 %v239_v55 }
 0x108   :  { %451 = vpow2.f32 %v241_v57  ;;  %p527_p5 = pnand %p526_p4, %p520_p1 }
 0x109   :  { %453 = vpow2.f32 %v243_v58 }
 0x10a   :  { %455 = vpow2.f32 %v245_v59 }
 0x110   :  { %v442_v60 = vpop.eup %441 }
 0x111   :  { %v444_v61 = vpop.eup %443  ;;  %v247_v62 = vsel %vm69_vm0, %v442_v60, 0.0 }
 0x112   :  { %v248_v63 = vsel %vm69_vm0, %v444_v61, 0.0  ;;  %v446_v1 = vpop.eup %445 }
 0x113   :  { %v249_v0 = vadd.f32 %v248_v63, %v247_v62  ;;  %v448_v2 = vpop.eup %447  ;;  %v252_v6 = vsel %vm69_vm0, %v446_v1, 0.0 }
 0x114   :  { %v250_v3 = vsel %vm69_vm0, %v448_v2, 0.0  ;;  %v450_v4 = vpop.eup %449 }
 0x115   :  { %v251_v5 = vadd.f32 %v250_v3, %v249_v0  ;;  %v452_v7 = vpop.eup %451  ;;  %v254_v9 = vsel %vm69_vm0, %v450_v4, 0.0 }
 0x116   :  { %v454_v10 = vpop.eup %453  ;;  %v256_v12 = vsel %vm69_vm0, %v452_v7, 0.0 }
 0x117   :  { %v253_v8 = vadd.f32 %v252_v6, %v251_v5  ;;  %v456_v13 = vpop.eup %455  ;;  %v258_v15 = vsel %vm69_vm0, %v454_v10, 0.0 }
 0x118   :  { %v260_v17 = vsel %vm69_vm0, %v456_v13, 0.0 }
 0x119   :  { %v255_v11 = vadd.f32 %v254_v9, %v253_v8 }
 0x11b   :  { %v257_v14 = vadd.f32 %v256_v12, %v255_v11 }
 0x11d   :  { %v259_v16 = vadd.f32 %v258_v15, %v257_v14 }
 0x11f   :  { %v261_v18 = vadd.f32 %v260_v17, %v259_v16 }
 0x121   :  { %457 = vrcp.f32 %v261_v18 }
 0x12e   :  { %v458_v20 = vpop.eup %457 }
 0x12f   :  { %v270_v21 = vmul.f32 %v458_v20, %v394_v19 }
 0x131   :  { %v273_v22 = vmul.f32 %v448_v2, %v270_v21  ;;  %v271_v23 = vmul.f32 %v442_v60, %v270_v21  ;;  %v274_v26 = vmul.f32 %v446_v1, %v270_v21  ;;  %v272_v27 = vmul.f32 %v444_v61, %v270_v21 }
 0x132   :  { %v276_v30 = vmul.f32 %v452_v7, %v270_v21  ;;  %v275_v31 = vmul.f32 %v450_v4, %v270_v21  ;;  %v278_v34 = vmul.f32 %v456_v13, %v270_v21  ;;  %v277_v35 = vmul.f32 %v454_v10, %v270_v21 }
 0x133   :  { %v285_v24 = vsel %vm69_vm0, %v273_v22, 0.0  ;;  %v279_v25 = vsel %vm69_vm0, %v271_v23, 0.0  ;;  %v288_v28 = vsel %vm69_vm0, %v274_v26, 0.0  ;;  %v282_v29 = vsel %vm69_vm0, %v272_v27, 0.0 }
 0x134   :  { %286 = vadd.xlane.f32.xlu1 %v285_v24  ;;  %280 = vadd.xlane.f32.xlu0 %v279_v25  ;;  %v294_v32 = vsel %vm69_vm0, %v276_v30, 0.0  ;;  %v291_v33 = vsel %vm69_vm0, %v275_v31, 0.0  ;;  %v300_v36 = vsel %vm69_vm0, %v278_v34, 0.0  ;;  %v297_v37 = vsel %vm69_vm0, %v277_v35, 0.0 }
 0x138   :  { %289 = vadd.xlane.f32.xlu1 %v288_v28  ;;  %283 = vadd.xlane.f32.xlu0 %v282_v29 }
 0x13c   :  { %295 = vadd.xlane.f32.xlu1 %v294_v32  ;;  %292 = vadd.xlane.f32.xlu0 %v291_v33 }
 0x140   :  { %301 = vadd.xlane.f32.xlu1 %v300_v36  ;;  %298 = vadd.xlane.f32.xlu0 %v297_v37 }
 0x1bd   :  { %v287_v41 = vpop.xlane.xlu1 %286  ;;  %v281_v42 = vpop.xlane.xlu0 %280 }
 0x1be   :  { %v303_v44 = vmax.f32 %v281_v42, 0.0  ;;  %v305_v45 = vmax.f32 %v287_v41, 0.0 }
 0x1c0   :  { %v324_v50 = vrot.slane %v303_v44, %v323_v43  ;;  %v332_v52 = vrot.slane %v305_v45, %v323_v43 }
 0x1c1   :  { %v290_v46 = vpop.xlane.xlu1 %289  ;;  %v284_v47 = vpop.xlane.xlu0 %283 }
 0x1c2   :  { %v306_v48 = vmax.f32 %v290_v46, 0.0  ;;  %v304_v49 = vmax.f32 %v284_v47, 0.0 }
 0x1c4   :  { %v328_v51 = vrot.slane %v304_v49, %v323_v43  ;;  %v336_v55 = vrot.slane %v306_v48, %v323_v43 }
 0x1c5   :  { %v296_v53 = vpop.xlane.xlu1 %295  ;;  %v293_v54 = vpop.xlane.xlu0 %292 }
 0x1c6   :  { %v354_v56 = vsel %vm353_vm1, %v328_v51, %v324_v50  ;;  %v308_v57 = vmax.f32 %v296_v53, 0.0  ;;  %v307_v58 = vmax.f32 %v293_v54, 0.0 }
 0x1c7   :  { %v356_v59 = vsel %vm355_vm2, %v332_v52, %v354_v56 }
 0x1c8   :  { %v358_v60 = vsel %vm357_vm3, %v336_v55, %v356_v59  ;;  %v340_v61 = vrot.slane %v307_v58, %v323_v43  ;;  %v344_v62 = vrot.slane %v308_v57, %v323_v43 }
 0x1c9   :  { %v302_v63 = vpop.xlane.xlu1 %301  ;;  %v299_v0 = vpop.xlane.xlu0 %298 }
 0x1ca   :  { %v360_v1 = vsel %vm359_vm4, %v340_v61, %v358_v60  ;;  %v310_v2 = vmax.f32 %v302_v63, 0.0  ;;  %v309_v3 = vmax.f32 %v299_v0, 0.0 }
 0x1cb   :  { %v362_v6 = vsel %vm361_vm5, %v344_v62, %v360_v1 }
 0x1cc   :  { %v352_v4 = vrot.slane %v310_v2, %v323_v43  ;;  %v348_v5 = vrot.slane %v309_v3, %v323_v43 }
 0x1ce   :  { %v364_v7 = vsel %vm363_vm6, %v348_v5, %v362_v6 }
 0x1cf   :  { %v366_v8 = vsel %vm365_vm7, %v352_v4, %v364_v7 }
 0x1d0   :  { %369 = vst.msk [vmem:[#allocation8] sm:$0xff] %vm368_vm8, %v366_v8 }
 0x1d1   :  { %530 = shalt.err (!%p527_p5)
}
 0x1d2   :  { %379 = dma.vmem_to_hbm [thread:$0]  %s377_s5, 128, %s627_s4, [#allocation4]  }
 0x1d3   :  { %543 = dma.done.wait [#allocation4], 128  }
 0x1d4   :  { %544 = vsyncadd [#allocation4], 4294967168 }
 0x1d5   :  { %383 = vsyncpa [#allocation3], 1 }
 0x1d6   :  { %384 = vsyncpa [#allocation6], 1 }
 0x1d7   :  { %385 = vsyncpa [#allocation4], 1 }

</bundles_post_ra>
